<compile_context>
chip_gen: v6e
topology: v6e:2x2x1
jax: 0.10.0
libtpu: 0.0.40
codegen_flags: <defaults>
</compile_context>

<pallas_src>
import jax
import jax.numpy as jnp
from jax.experimental import pallas as pl
from jax.experimental.pallas import tpu as pltpu

HIDDEN = 64
OUT_DIM = 3
OUT_PAD = 8          # fc3 output rows padded to one full sublane group for the MXU
LANE = 128
TB_MAX = 8192        # batch tile (lanes) per grid step


def _round_up(x, m):
    return ((x + m - 1) // m) * m


def actor_kernel(state_ref, w1_ref, b1_ref, w2_ref, b2_ref, w3_ref, b3_ref,
                 scale_ref, sigmask_ref, out_ref):
    """One batch tile of the Actor MLP, transposed (batch-on-lanes) layout.

    state_ref : (S, TB)         compute dtype (bf16 or f32)
    wK_ref    : (out, in)       compute dtype (pre-transposed for left-multiply)
    bK_ref    : (out, 1)        f32
    scale_ref / sigmask_ref : (OUT_PAD, 1) f32 head scale / sigmoid selector
    out_ref   : (OUT_DIM, TB)   f32, lane-dense store (3 sublane rows)
    """
    cdt = w1_ref.dtype

    x = state_ref[...]                                              # (S, TB)

    # fc1 + relu   (h1^T = W1^T x^T)
    h1 = jnp.dot(w1_ref[...], x, preferred_element_type=jnp.float32)
    h1 = jnp.maximum(h1 + b1_ref[...], 0.0).astype(cdt)             # (64, TB)

    # fc2 + relu
    h2 = jnp.dot(w2_ref[...], h1, preferred_element_type=jnp.float32)
    h2 = jnp.maximum(h2 + b2_ref[...], 0.0).astype(cdt)             # (64, TB)

    # fc3 (rows 0..2 real, rows 3..7 zero-padded so the MXU tile is full)
    z = jnp.dot(w3_ref[...], h2, preferred_element_type=jnp.float32)
    z = z + b3_ref[...]                                             # (8, TB) f32

    # Per-row head: rows 0/1 -> relu * scale, row 2 -> sigmoid, padding rows
    # are dropped by the [:OUT_DIM] slice before the store.
    head = jnp.where(sigmask_ref[...] != 0.0,
                     jax.nn.sigmoid(z),
                     jnp.maximum(z, 0.0) * scale_ref[...])
    out_ref[...] = head[:OUT_DIM, :].astype(out_ref.dtype)


def actor_forward(state, params, *, max_rent, max_lease_length,
                  use_bf16=True, tb=TB_MAX):
    """state: (B, state_dim) f32. Returns (B, 3) f32."""
    w1, b1, w2, b2, w3, b3 = params          # wK: (in, out) f32, bK: (out,) f32
    B, S = state.shape
    cdt = jnp.bfloat16 if use_bf16 else jnp.float32

    # Batch tile (multiple of 128 lanes) and padded batch.
    tb = min(tb, _round_up(max(B, 1), LANE))
    b_pad = _round_up(B, tb)
    grid = (b_pad // tb,)

    # Transposed, lane-dense layout: batch on lanes, features on sublanes.
    state_t = jnp.zeros((S, b_pad), cdt).at[:, :B].set(state.T.astype(cdt))

    w1_t = w1.T.astype(cdt)                                      # (64, S)
    w2_t = w2.T.astype(cdt)                                      # (64, 64)
    w3_t = jnp.zeros((OUT_PAD, HIDDEN), cdt).at[:OUT_DIM, :].set(w3.T.astype(cdt))
    b1_c = b1.reshape(HIDDEN, 1).astype(jnp.float32)
    b2_c = b2.reshape(HIDDEN, 1).astype(jnp.float32)
    b3_c = jnp.zeros((OUT_PAD, 1), jnp.float32).at[:OUT_DIM, 0].set(
        b3.reshape(-1).astype(jnp.float32))

    # Resident head constants: scale per row + "use sigmoid" row mask.
    scale = (jnp.ones((OUT_PAD, 1), jnp.float32)
             .at[0, 0].set(float(max_rent))
             .at[1, 0].set(float(max_lease_length)))
    sigmask = jnp.zeros((OUT_PAD, 1), jnp.float32).at[2, 0].set(1.0)

    const = lambda i: (0, 0)     # weights/biases stay resident across the grid
    batch = lambda i: (0, i)     # state / output tiled along the batch (lane) axis

    flops = 2 * b_pad * (S * HIDDEN + HIDDEN * HIDDEN + HIDDEN * OUT_PAD)
    bytes_accessed = (
        state_t.size * state_t.dtype.itemsize
        + sum(int(a.size) * a.dtype.itemsize
              for a in (w1_t, w2_t, w3_t, b1_c, b2_c, b3_c, scale, sigmask))
        + OUT_DIM * b_pad * 4)

    out_t = pl.pallas_call(
        actor_kernel,
        out_shape=jax.ShapeDtypeStruct((OUT_DIM, b_pad), jnp.float32),
        grid=grid,
        in_specs=[
            pl.BlockSpec((S, tb), batch),            # state tile
            pl.BlockSpec((HIDDEN, S), const),        # W1^T   (resident)
            pl.BlockSpec((HIDDEN, 1), const),        # b1
            pl.BlockSpec((HIDDEN, HIDDEN), const),   # W2^T
            pl.BlockSpec((HIDDEN, 1), const),        # b2
            pl.BlockSpec((OUT_PAD, HIDDEN), const),  # W3^T (row-padded to 8)
            pl.BlockSpec((OUT_PAD, 1), const),       # b3
            pl.BlockSpec((OUT_PAD, 1), const),       # head scale
            pl.BlockSpec((OUT_PAD, 1), const),       # sigmoid row mask
        ],
        out_specs=pl.BlockSpec((OUT_DIM, tb), batch),
        compiler_params=pltpu.CompilerParams(
            dimension_semantics=("parallel",),       # v7x: shard batch over 2 TCs
            vmem_limit_bytes=32 * 1024 * 1024),      # per-step tiles ~5 MB << limit
        cost_estimate=pl.CostEstimate(flops=flops,
                                      transcendentals=OUT_PAD * b_pad,
                                      bytes_accessed=bytes_accessed),
    )(state_t, w1_t, b1_c, w2_t, b2_c, w3_t, b3_c, scale, sigmask)

    # Drop padded batch columns and return torch layout (B, 3).
    return out_t[:, :B].T


def init_actor_params(key, state_dim, hidden=HIDDEN, out_dim=OUT_DIM):
    """Deterministic init (PyTorch-Linear-style uniform fan-in bounds)."""
    def linear(k, fan_in, fan_out):
        kw, kb = jax.random.split(k)
        bound = 1.0 / jnp.sqrt(jnp.float32(fan_in))
        w = jax.random.uniform(kw, (fan_in, fan_out), jnp.float32, -bound, bound)
        b = jax.random.uniform(kb, (fan_out,), jnp.float32, -bound, bound)
        return w, b

    k1, k2, k3 = jax.random.split(key, 3)
    w1, b1 = linear(k1, state_dim, hidden)
    w2, b2 = linear(k2, hidden, hidden)
    w3, b3 = linear(k3, hidden, out_dim)
    return (w1, b1, w2, b2, w3, b3)


def actor_reference(state, params, *, max_rent, max_lease_length,
                    compute_dtype=jnp.float32):
    """Pure-JAX reference mirroring the PyTorch forward.

    compute_dtype=bfloat16 mirrors the kernel's bf16-operand / f32-accumulate
    matmul precision; float32 is the exact torch-semantics reference.
    """
    w1, b1, w2, b2, w3, b3 = params
    cdt = compute_dtype
    x = state.astype(cdt)
    h1 = jnp.maximum(jnp.dot(x, w1.astype(cdt),
                             preferred_element_type=jnp.float32) + b1, 0.0).astype(cdt)
    h2 = jnp.maximum(jnp.dot(h1, w2.astype(cdt),
                             preferred_element_type=jnp.float32) + b2, 0.0).astype(cdt)
    z = jnp.dot(h2, w3.astype(cdt), preferred_element_type=jnp.float32) + b3
    rent = jnp.maximum(z[:, 0], 0.0) * max_rent
    lease = jnp.maximum(z[:, 1], 0.0) * max_lease_length
    vac = jax.nn.sigmoid(z[:, 2])
    return jnp.stack([rent, lease, vac], axis=1)


if __name__ == "__main__":
    B = 2
    STATE_DIM = 8
    MAX_RENT = 1000.0
    MAX_LEASE_LENGTH = 24.0

    key = jax.random.PRNGKey(0)
    k_params, k_state = jax.random.split(key)
    params = init_actor_params(k_params, STATE_DIM)
    state = jax.random.normal(k_state, (B, STATE_DIM), jnp.float32)

    # 1) f32 path: torch semantics (only MXU accumulation-order diffs).
    out_f32 = jax.block_until_ready(
        actor_forward(state, params, max_rent=MAX_RENT,
                      max_lease_length=MAX_LEASE_LENGTH, use_bf16=False))
    ref_f32 = actor_reference(state, params, max_rent=MAX_RENT,
                              max_lease_length=MAX_LEASE_LENGTH)
    assert out_f32.shape == (B, 3)
    assert jnp.allclose(out_f32, ref_f32, atol=1e-3, rtol=1e-3), (out_f32, ref_f32)

    # 2) bf16-MXU path (default, bandwidth-optimized): validated against a
    #    reference that applies the same bf16-operand / f32-accumulate precision.
    out_bf16 = jax.block_until_ready(
        actor_forward(state, params, max_rent=MAX_RENT,
                      max_lease_length=MAX_LEASE_LENGTH, use_bf16=True))
    ref_bf16 = actor_reference(state, params, max_rent=MAX_RENT,
                               max_lease_length=MAX_LEASE_LENGTH,
                               compute_dtype=jnp.bfloat16)
    assert out_bf16.shape == (B, 3)
    assert jnp.allclose(out_bf16, ref_bf16, atol=5e-2, rtol=5e-2), (out_bf16, ref_bf16)

    print("KERNEL_OK")
</pallas_src>

<mosaic_0001>
module attributes {stable_mosaic.version = 11 : i64} {
  func.func @actor_kernel(%arg0: i32, %arg1: memref<8x128xf32, #tpu.memory_space<vmem>>, %arg2: memref<64x8xf32, #tpu.memory_space<vmem>>, %arg3: memref<64x1xf32, #tpu.memory_space<vmem>>, %arg4: memref<64x64xf32, #tpu.memory_space<vmem>>, %arg5: memref<64x1xf32, #tpu.memory_space<vmem>>, %arg6: memref<8x64xf32, #tpu.memory_space<vmem>>, %arg7: memref<8x1xf32, #tpu.memory_space<vmem>>, %arg8: memref<8x1xf32, #tpu.memory_space<vmem>>, %arg9: memref<8x1xf32, #tpu.memory_space<vmem>>, %arg10: memref<3x128xf32, #tpu.memory_space<vmem>>) attributes {dimension_semantics = [#tpu.dimension_semantics<parallel>], iteration_bounds = array<i64: 1>, scalar_prefetch = 0 : i64, scratch_operands = 0 : i64, tpu.core_type = #tpu.core_type<tc>, window_params = [{transform_indices = @transform_0, window_bounds = array<i64: 8, 128>}, {pipeline_mode = #tpu.pipeline_mode<synchronous>, transform_indices = @transform_1, window_bounds = array<i64: 64, 8>}, {pipeline_mode = #tpu.pipeline_mode<synchronous>, transform_indices = @transform_2, window_bounds = array<i64: 64, 1>}, {pipeline_mode = #tpu.pipeline_mode<synchronous>, transform_indices = @transform_3, window_bounds = array<i64: 64, 64>}, {pipeline_mode = #tpu.pipeline_mode<synchronous>, transform_indices = @transform_4, window_bounds = array<i64: 64, 1>}, {pipeline_mode = #tpu.pipeline_mode<synchronous>, transform_indices = @transform_5, window_bounds = array<i64: 8, 64>}, {pipeline_mode = #tpu.pipeline_mode<synchronous>, transform_indices = @transform_6, window_bounds = array<i64: 8, 1>}, {pipeline_mode = #tpu.pipeline_mode<synchronous>, transform_indices = @transform_7, window_bounds = array<i64: 8, 1>}, {pipeline_mode = #tpu.pipeline_mode<synchronous>, transform_indices = @transform_8, window_bounds = array<i64: 8, 1>}, {transform_indices = @transform_9, window_bounds = array<i64: 3, 128>}]} {
    %c0 = arith.constant 0 : index
    %c0_0 = arith.constant 0 : index
    %0 = vector.load %arg1[%c0, %c0_0] : memref<8x128xf32, #tpu.memory_space<vmem>>, vector<8x128xf32>
    %c0_1 = arith.constant 0 : index
    %c0_2 = arith.constant 0 : index
    %1 = vector.load %arg2[%c0_1, %c0_2] : memref<64x8xf32, #tpu.memory_space<vmem>>, vector<64x8xf32>
    %cst = arith.constant dense<0.000000e+00> : vector<64x128xf32>
    %2 = tpu.matmul %1, %0, %cst {dimension_numbers = #tpu.dot_dimension_numbers<[1], [0], [0], [1], [0, 0, 1, 1], [], []>} : vector<64x8xf32>, vector<8x128xf32>, vector<64x128xf32> -> vector<64x128xf32>
    %c0_3 = arith.constant 0 : index
    %c0_4 = arith.constant 0 : index
    %3 = vector.load %arg3[%c0_3, %c0_4] : memref<64x1xf32, #tpu.memory_space<vmem>>, vector<64x1xf32>
    %4 = vector.broadcast %3 : vector<64x1xf32> to vector<64x128xf32>
    %5 = arith.addf %2, %4 : vector<64x128xf32>
    %cst_5 = arith.constant 0.000000e+00 : f32
    %6 = vector.broadcast %cst_5 : f32 to vector<64x128xf32>
    %7 = arith.maximumf %5, %6 : vector<64x128xf32>
    %c0_6 = arith.constant 0 : index
    %c0_7 = arith.constant 0 : index
    %8 = vector.load %arg4[%c0_6, %c0_7] : memref<64x64xf32, #tpu.memory_space<vmem>>, vector<64x64xf32>
    %cst_8 = arith.constant dense<0.000000e+00> : vector<64x128xf32>
    %9 = tpu.matmul %8, %7, %cst_8 {dimension_numbers = #tpu.dot_dimension_numbers<[1], [0], [0], [1], [0, 0, 1, 1], [], []>} : vector<64x64xf32>, vector<64x128xf32>, vector<64x128xf32> -> vector<64x128xf32>
    %c0_9 = arith.constant 0 : index
    %c0_10 = arith.constant 0 : index
    %10 = vector.load %arg5[%c0_9, %c0_10] : memref<64x1xf32, #tpu.memory_space<vmem>>, vector<64x1xf32>
    %11 = vector.broadcast %10 : vector<64x1xf32> to vector<64x128xf32>
    %12 = arith.addf %9, %11 : vector<64x128xf32>
    %cst_11 = arith.constant 0.000000e+00 : f32
    %13 = vector.broadcast %cst_11 : f32 to vector<64x128xf32>
    %14 = arith.maximumf %12, %13 : vector<64x128xf32>
    %c0_12 = arith.constant 0 : index
    %c0_13 = arith.constant 0 : index
    %15 = vector.load %arg6[%c0_12, %c0_13] : memref<8x64xf32, #tpu.memory_space<vmem>>, vector<8x64xf32>
    %cst_14 = arith.constant dense<0.000000e+00> : vector<8x128xf32>
    %16 = tpu.matmul %15, %14, %cst_14 {dimension_numbers = #tpu.dot_dimension_numbers<[1], [0], [0], [1], [0, 0, 1, 1], [], []>} : vector<8x64xf32>, vector<64x128xf32>, vector<8x128xf32> -> vector<8x128xf32>
    %c0_15 = arith.constant 0 : index
    %c0_16 = arith.constant 0 : index
    %17 = vector.load %arg7[%c0_15, %c0_16] : memref<8x1xf32, #tpu.memory_space<vmem>>, vector<8x1xf32>
    %18 = vector.broadcast %17 : vector<8x1xf32> to vector<8x128xf32>
    %19 = arith.addf %16, %18 : vector<8x128xf32>
    %c0_17 = arith.constant 0 : index
    %c0_18 = arith.constant 0 : index
    %20 = vector.load %arg9[%c0_17, %c0_18] : memref<8x1xf32, #tpu.memory_space<vmem>>, vector<8x1xf32>
    %cst_19 = arith.constant 0.000000e+00 : f32
    %21 = vector.broadcast %cst_19 : f32 to vector<8x1xf32>
    %22 = arith.cmpf one, %20, %21 : vector<8x1xf32>
    %23 = arith.negf %19 : vector<8x128xf32>
    %24 = math.exp %23 : vector<8x128xf32>
    %cst_20 = arith.constant 1.000000e+00 : f32
    %25 = vector.broadcast %cst_20 : f32 to vector<8x128xf32>
    %26 = arith.addf %25, %24 : vector<8x128xf32>
    %27 = arith.divf %25, %26 : vector<8x128xf32>
    %cst_21 = arith.constant 0.000000e+00 : f32
    %28 = vector.broadcast %cst_21 : f32 to vector<8x128xf32>
    %29 = arith.maximumf %19, %28 : vector<8x128xf32>
    %c0_22 = arith.constant 0 : index
    %c0_23 = arith.constant 0 : index
    %30 = vector.load %arg8[%c0_22, %c0_23] : memref<8x1xf32, #tpu.memory_space<vmem>>, vector<8x1xf32>
    %31 = vector.broadcast %30 : vector<8x1xf32> to vector<8x128xf32>
    %32 = arith.mulf %29, %31 : vector<8x128xf32>
    %33 = vector.shape_cast %22 : vector<8x1xi1> to vector<8x1xi1>
    %34 = vector.broadcast %33 : vector<8x1xi1> to vector<8x128xi1>
    %35 = arith.select %34, %27, %32 : vector<8x128xi1>, vector<8x128xf32>
    %36 = vector.extract_strided_slice %35 {offsets = [0, 0], sizes = [3, 128], strides = [1, 1]} : vector<8x128xf32> to vector<3x128xf32>
    %c0_24 = arith.constant 0 : index
    %c0_25 = arith.constant 0 : index
    %37 = vector.load %arg10[%c0_24, %c0_25] : memref<3x128xf32, #tpu.memory_space<vmem>>, vector<3x128xf32>
    tpu.vector_store %arg10[%c0_24, %c0_25], %36 {strides = array<i32>} : memref<3x128xf32, #tpu.memory_space<vmem>>, vector<3x128xf32>,
    return
  }
  func.func @transform_0(%arg0: i32) -> (i32, i32) {
    %c0_i32 = arith.constant 0 : i32
    %c0_i32_0 = arith.constant 0 : i32
    return %c0_i32, %arg0 : i32, i32
  }
  func.func @transform_1(%arg0: i32) -> (i32, i32) {
    %c0_i32 = arith.constant 0 : i32
    %c0_i32_0 = arith.constant 0 : i32
    %c0_i32_1 = arith.constant 0 : i32
    return %c0_i32, %c0_i32_0 : i32, i32
  }
  func.func @transform_2(%arg0: i32) -> (i32, i32) {
    %c0_i32 = arith.constant 0 : i32
    %c0_i32_0 = arith.constant 0 : i32
    %c0_i32_1 = arith.constant 0 : i32
    return %c0_i32, %c0_i32_0 : i32, i32
  }
  func.func @transform_3(%arg0: i32) -> (i32, i32) {
    %c0_i32 = arith.constant 0 : i32
    %c0_i32_0 = arith.constant 0 : i32
    %c0_i32_1 = arith.constant 0 : i32
    return %c0_i32, %c0_i32_0 : i32, i32
  }
  func.func @transform_4(%arg0: i32) -> (i32, i32) {
    %c0_i32 = arith.constant 0 : i32
    %c0_i32_0 = arith.constant 0 : i32
    %c0_i32_1 = arith.constant 0 : i32
    return %c0_i32, %c0_i32_0 : i32, i32
  }
  func.func @transform_5(%arg0: i32) -> (i32, i32) {
    %c0_i32 = arith.constant 0 : i32
    %c0_i32_0 = arith.constant 0 : i32
    %c0_i32_1 = arith.constant 0 : i32
    return %c0_i32, %c0_i32_0 : i32, i32
  }
  func.func @transform_6(%arg0: i32) -> (i32, i32) {
    %c0_i32 = arith.constant 0 : i32
    %c0_i32_0 = arith.constant 0 : i32
    %c0_i32_1 = arith.constant 0 : i32
    return %c0_i32, %c0_i32_0 : i32, i32
  }
  func.func @transform_7(%arg0: i32) -> (i32, i32) {
    %c0_i32 = arith.constant 0 : i32
    %c0_i32_0 = arith.constant 0 : i32
    %c0_i32_1 = arith.constant 0 : i32
    return %c0_i32, %c0_i32_0 : i32, i32
  }
  func.func @transform_8(%arg0: i32) -> (i32, i32) {
    %c0_i32 = arith.constant 0 : i32
    %c0_i32_0 = arith.constant 0 : i32
    %c0_i32_1 = arith.constant 0 : i32
    return %c0_i32, %c0_i32_0 : i32, i32
  }
  func.func @transform_9(%arg0: i32) -> (i32, i32) {
    %c0_i32 = arith.constant 0 : i32
    %c0_i32_0 = arith.constant 0 : i32
    return %c0_i32, %arg0 : i32, i32
  }
}

</mosaic_0001>

<bundles_post_ra>
// kernel: tpu_custom_call.1
= control target key start
LH: loop header
LB: loop body
LE: loop exit
PB: predicated region body
PF: predicated region fallthrough
CT: control target
= control target key end

     0   :  { %vm90_vm0 = vcmask 64512   ;;  %v684_v4 = vmov 0   ;;  %s869_s0 = inlined_call_operand.vmem [shape: f32[8,128], index: 0, kind: input, shape index: {}]   ;;  %s870_s1 = inlined_call_operand.vmem [shape: f32[64,8], index: 1, kind: input, shape index: {}]   ;;  %s871_s2 = inlined_call_operand.vmem [shape: f32[64,1], index: 2, kind: input, shape index: {}]   ;;  %s872_s3 = inlined_call_operand.vmem [shape: f32[64,64], index: 3, kind: input, shape index: {}]   ;;  %s873_s4 = inlined_call_operand.vmem [shape: f32[64,1], index: 4, kind: input, shape index: {}]   ;;  %s874_s5 = inlined_call_operand.vmem [shape: f32[8,64], index: 5, kind: input, shape index: {}]   ;;  %s875_s6 = inlined_call_operand.vmem [shape: f32[8,1], index: 6, kind: input, shape index: {}]   ;;  %s876_s7 = inlined_call_operand.vmem [shape: f32[8,1], index: 7, kind: input, shape index: {}]   ;;  %s877_s8 = inlined_call_operand.vmem [shape: f32[8,1], index: 8, kind: input, shape index: {}]   ;;  %s878_s9 = inlined_call_operand.hbm [shape: f32[3,128], index: 9, kind: output, shape index: {}]  }
   0x1   :  { %v33_v0 = vld [vmem:[%s869_s0] sm:$0xff]  ;;  %v35_v2 = vld [vmem:[%s870_s1 + $0x8] sm:$0xff]  ;;  %v36_v3 = vld [vmem:[%s870_s1 + $0x10] sm:$0xff]  ;;  %656 = vset.pattern.permute.xlu0 %v684_v4  ;;  %657 = vset.pattern.permute.xlu1 %v684_v4 }
   0x2   :  { %v34_v1 = vld [vmem:[%s870_s1] sm:$0xff]  ;;  %591 = vmatprep.subr.mxu0 %v33_v0  ;;  %v49_v5 = vld [vmem:[%s871_s2 + $0x38] sm:$0xff]  ;;  %v47_v6 = vld [vmem:[%s871_s2 + $0x28] sm:$0xff] }
   0x3   :  { %593 = vmatprep.mubr.msk.f32.mxu0 %vm90_vm0, %v34_v1  ;;  %592 = vmatpush3.msra.mxu0 %v33_v0  ;;  %v37_v7 = vld [vmem:[%s870_s1 + $0x18] sm:$0xff]  ;;  %v38_v8 = vld [vmem:[%s870_s1 + $0x20] sm:$0xff]  ;;  %v48_v9 = vld [vmem:[%s871_s2 + $0x30] sm:$0xff] }
   0x4   :  { %594 = vmatmul.mubr.msk.f32.vlgmr.msra.gmra.mxu0 %vm90_vm0, %v35_v2  ;;  %87 = vperm.xlu0 %656, %v49_v5   ;;  %v46_v10 = vld [vmem:[%s871_s2 + $0x20] sm:$0xff]  ;;  %v39_v11 = vld [vmem:[%s870_s1 + $0x28] sm:$0xff]  ;;  %v40_v12 = vld [vmem:[%s870_s1 + $0x30] sm:$0xff] }
   0x5   :  { %596 = vmatprep.mubr.msk.f32.mxu0 %vm90_vm0, %v36_v3  ;;  %77 = vperm.xlu1 %657, %v47_v6   ;;  %v45_v13 = vld [vmem:[%s871_s2 + $0x18] sm:$0xff] }
   0x8   :  { %597 = vmatmul.mubr.msk.f32.gmra.mxu0 %vm90_vm0, %v37_v7  ;;  %82 = vperm.xlu0 %656, %v48_v9  }
   0x9   :  { %599 = vmatprep.mubr.msk.f32.mxu0 %vm90_vm0, %v38_v8  ;;  %72 = vperm.xlu1 %657, %v46_v10  }
   0xa   :  { %14 = vsyncpa [#allocation3], 0  ;;  %v44_v14 = vld [vmem:[%s871_s2 + $0x10] sm:$0xff]  ;;  %v41_v15 = vld [vmem:[%s870_s1 + $0x38] sm:$0xff]  ;;  %vm284_vm2 = vcmask 523264   ;;  %v685_v6 = vmov 0.0  }
   0xb   :  { %v43_v16 = vld [vmem:[%s871_s2 + $0x8] sm:$0xff]  ;;  %v42_v17 = vld [vmem:[%s871_s2] sm:$0xff]  ;;  %v243_v18 = vld [vmem:[%s873_s4 + $0x38] sm:$0xff]  ;;  %633 = vmatprep.subr.mxu0 %v685_v6  ;;  %vm686_vm3 = vmmov 0   ;;  %s687_s29 = smov [#allocation2]  }
   0xc   :  { %600 = vmatmul.mubr.msk.f32.gmra.mxu0 %vm90_vm0, %v39_v11  ;;  %67 = vperm.xlu0 %656, %v45_v13   ;;  %v242_v19 = vld [vmem:[%s873_s4 + $0x30] sm:$0xff]  ;;  %v241_v20 = vld [vmem:[%s873_s4 + $0x28] sm:$0xff]  ;;  %v240_v21 = vld [vmem:[%s873_s4 + $0x20] sm:$0xff]  ;;  %s531_s30 = sshll.u32 %s687_s29, 4  ;;  %s532_s30 = int_to_ptr.vmem [resolvable:$true] %s531_s30 }
   0xd   :  { %602 = vmatprep.mubr.msk.f32.mxu0 %vm90_vm0, %v40_v12  ;;  %62 = vperm.xlu1 %657, %v44_v14   ;;  %v239_v22 = vld [vmem:[%s873_s4 + $0x18] sm:$0xff]  ;;  %v238_v23 = vld [vmem:[%s873_s4 + $0x10] sm:$0xff]  ;;  %v237_v24 = vld [vmem:[%s873_s4 + $0x8] sm:$0xff]  ;;  %p667_p1 = scmp.lt.s32.totalorder %s532_s30, %s532_s30 }
   0xe   :  { %v236_v25 = vld [vmem:[%s873_s4] sm:$0xff]  ;;  %v229_v63 = vld [vmem:[%s872_s3 + $0x8] sm:$0xff]  ;;  %v230_v0 = vld [vmem:[%s872_s3 + $0x10] sm:$0xff] }
   0xf   :  { %v502_v26 = vld [vmem:[%s877_s8] sm:$0xff]  ;;  %v231_v1 = vld [vmem:[%s872_s3 + $0x18] sm:$0xff]  ;;  %v233_v3 = vld [vmem:[%s872_s3 + $0x28] sm:$0xff] }
  0x10   :  { %603 = vmatmul.mubr.msk.f32.gmra.mxu0 %vm90_vm0, %v41_v15  ;;  %57 = vperm.xlu0 %656, %v43_v16   ;;  %v423_v27 = vld [vmem:[%s875_s6] sm:$0xff]  ;;  %vm503_vm1 = vcmp.ne.f32.partialorder %v502_v26, 0.0  ;;  %v235_v5 = vld [vmem:[%s872_s3 + $0x38] sm:$0xff] }
  0x11   :  { %52 = vperm.xlu1 %657, %v42_v17   ;;  %v511_v28 = vld [vmem:[%s876_s7] sm:$0xff]  ;;  %v518_v29 = vsel %vm503_vm1, 1, %v684_v4  ;;  %v234_v4 = vld [vmem:[%s872_s3 + $0x30] sm:$0xff]  ;;  %649 = vmatprep.mubr.msk.f32.mxu0 %vm686_vm3, %v685_v6 }
  0x12   :  { %v228_v30 = vld [vmem:[%s872_s3] sm:$0xff] }
  0x13   :  { %621 = vmatprep.mubr.msk.f32.mxu1 %vm284_vm2, %v228_v30  ;;  %v232_v2 = vld [vmem:[%s872_s3 + $0x20] sm:$0xff] }
  0x14   :  { %281 = vperm.xlu0 %656, %v243_v18  }
  0x15   :  { %276 = vperm.xlu1 %657, %v242_v19  }
  0x18   :  { %271 = vperm.xlu0 %656, %v241_v20  }
  0x19   :  { %266 = vperm.xlu1 %657, %v240_v21  }
  0x1c   :  { %261 = vperm.xlu0 %656, %v239_v22  }
  0x1d   :  { %256 = vperm.xlu1 %657, %v238_v23  }
  0x20   :  { %251 = vperm.xlu0 %656, %v237_v24  }
  0x21   :  { %246 = vperm.xlu1 %657, %v236_v25  }
  0x24   :  { %426 = vperm.xlu0 %656, %v423_v27  }
  0x25   :  { %514 = vperm.xlu1 %657, %v511_v28  }
  0x28   :  { %520 = vperm.xlu0 %656, %v518_v29  }
  0x7f   :  { %v88_v33 = vpop.permute.xlu0 %87 }
  0x80   :  { %v78_v35 = vpop.permute.xlu1 %77 }
  0x83   :  { %v83_v38 = vpop.permute.xlu0 %82 }
  0x84   :  { %v73_v40 = vpop.permute.xlu1 %72 }
  0x87   :  { %v68_v47 = vpop.permute.xlu0 %67 }
  0x88   :  { %v63_v50 = vpop.permute.xlu1 %62 }
  0x8b   :  { %v58_v55 = vpop.permute.xlu0 %57 }
  0x8c   :  { %v53_v58 = vpop.permute.xlu1 %52 }
  0x8f   :  { %v282_v9 = vpop.permute.xlu0 %281 }
  0x90   :  { %v277_v11 = vpop.permute.xlu1 %276 }
  0x93   :  { %v272_v14 = vpop.permute.xlu0 %271 }
  0x94   :  { %v267_v16 = vpop.permute.xlu1 %266 }
  0x97   :  { %v262_v23 = vpop.permute.xlu0 %261 }
  0x98   :  { %v257_v26 = vpop.permute.xlu1 %256 }
  0xc4   :  { %v595_v31 = vpop.f32.mrf.mxu0 }
  0xc5   :  { %v187_v56 = vadd.f32 %v595_v31, %v58_v55  ;;  %v252_v31 = vpop.permute.xlu0 %251 }
  0xc6   :  { %v181_v32 = vpop.f32.mrf.mxu0 }
  0xc7   :  { %v182_v59 = vadd.f32 %v181_v32, %v53_v58  ;;  %v221_v61 = vmax.f32 %v187_v56, 0.0 }
  0xc8   :  { %v598_v34 = vpop.f32.mrf.mxu0 }
  0xc9   :  { %v197_v51 = vadd.f32 %v598_v34, %v68_v47  ;;  %v220_v62 = vmax.f32 %v182_v59, 0.0  ;;  %v247_v34 = vpop.permute.xlu1 %246 }
  0xca   :  { %v191_v36 = vpop.f32.mrf.mxu0 }
  0xcb   :  { %v192_v53 = vadd.f32 %v191_v36, %v63_v50  ;;  %v223_v57 = vmax.f32 %v197_v51, 0.0 }
  0xcc   :  { %v601_v37 = vpop.f32.mrf.mxu0 }
  0xcd   :  { %v207_v44 = vadd.f32 %v601_v37, %v78_v35  ;;  %v222_v60 = vmax.f32 %v192_v53, 0.0 }
  0xce   :  { %v201_v39 = vpop.f32.mrf.mxu0 }
  0xcf   :  { %v202_v48 = vadd.f32 %v201_v39, %v73_v40  ;;  %v225_v52 = vmax.f32 %v207_v44, 0.0  ;;  %v422_v39 = vld [vmem:[%s874_s5] sm:$0xff]  ;;  %v427_v40 = vpop.permute.xlu0 %426  ;;  %s662_s5 = scalar_lea.vmem %s532_s30, 64 }
  0xd0   :  { %v604_v41 = vpop.f32.mrf.mxu0  ;;  %p663_p0 = scmp.ne.s32.totalorder %s532_s30, %s662_s5  ;;  %p668_p2 = scmp.lt.s32.totalorder %s662_s5, %s662_s5 }
  0xd1   :  { %v217_v42 = vadd.f32 %v604_v41, %v88_v33  ;;  %v224_v54 = vmax.f32 %v202_v48, 0.0 }
  0xd2   :  { %v211_v43 = vpop.f32.mrf.mxu0  ;;  %p669_p3 = por %p668_p2, %p667_p1 }
  0xd3   :  { %v227_v45 = vmax.f32 %v217_v42, 0.0  ;;  %v212_v46 = vadd.f32 %v211_v43, %v83_v38  ;;  %v521_v48 = vpop.permute.xlu0 %520 }
  0xd4   :  { %vm522_vm4 = vcmp.eq.s32.totalorder %v521_v48, 1  ;;  %p670_p4 = pnand %p669_p3, %p663_p0 }
  0xd5   :  { %v226_v49 = vmax.f32 %v212_v46, 0.0  ;;  %605 = vmatprep.subr.mxu1 %v227_v45 }
  0xd6   :  { %606 = vmatpush3.msra.mxu1 %v227_v45 }
  0xd7   :  { %607 = vmatprep.subr.mxu1 %v226_v49 }
  0xd8   :  { %608 = vmatpush3.msra.mxu1 %v226_v49  ;;  %v515_v49 = vpop.permute.xlu1 %514 }
  0xd9   :  { %609 = vmatprep.subr.mxu1 %v225_v52 }
  0xda   :  { %610 = vmatpush3.msra.mxu1 %v225_v52 }
  0xdb   :  { %611 = vmatprep.subr.mxu1 %v224_v54 }
  0xdc   :  { %612 = vmatpush3.msra.mxu1 %v224_v54 }
  0xdd   :  { %613 = vmatprep.subr.mxu1 %v223_v57 }
  0xde   :  { %614 = vmatpush3.msra.mxu1 %v223_v57 }
  0xdf   :  { %615 = vmatprep.subr.mxu1 %v222_v60 }
  0xe0   :  { %616 = vmatpush3.msra.mxu1 %v222_v60 }
  0xe1   :  { %617 = vmatprep.subr.mxu1 %v221_v61 }
  0xe2   :  { %618 = vmatpush3.msra.mxu1 %v221_v61 }
  0xe3   :  { %619 = vmatprep.subr.mxu1 %v220_v62 }
  0xe4   :  { %620 = vmatpush3.msra.mxu1 %v220_v62 }
  0xe5   :  { %622 = vmatmul.mubr.msk.f32.vlgmr.msra.gmra.mxu1 %vm284_vm2, %v229_v63 }
  0xe6   :  { %624 = vmatprep.mubr.msk.f32.mxu1 %vm284_vm2, %v230_v0 }
  0xe9   :  { %625 = vmatmul.mubr.msk.f32.gmra.mxu1 %vm284_vm2, %v231_v1 }
  0xea   :  { %627 = vmatprep.mubr.msk.f32.mxu1 %vm284_vm2, %v232_v2 }
  0xed   :  { %628 = vmatmul.mubr.msk.f32.gmra.mxu1 %vm284_vm2, %v233_v3 }
  0xee   :  { %630 = vmatprep.mubr.msk.f32.mxu1 %vm284_vm2, %v234_v4 }
  0xf1   :  { %631 = vmatmul.mubr.msk.f32.gmra.mxu1 %vm284_vm2, %v235_v5 }
 0x1a5   :  { %v623_v7 = vpop.f32.mrf.mxu1 }
 0x1a6   :  { %v381_v32 = vadd.f32 %v623_v7, %v252_v31 }
 0x1a7   :  { %v375_v8 = vpop.f32.mrf.mxu1 }
 0x1a8   :  { %v376_v35 = vadd.f32 %v375_v8, %v247_v34  ;;  %v415_v37 = vmax.f32 %v381_v32, 0.0 }
 0x1a9   :  { %v626_v10 = vpop.f32.mrf.mxu1 }
 0x1aa   :  { %v391_v27 = vadd.f32 %v626_v10, %v262_v23  ;;  %v414_v38 = vmax.f32 %v376_v35, 0.0 }
 0x1ab   :  { %v385_v12 = vpop.f32.mrf.mxu1 }
 0x1ac   :  { %v386_v29 = vadd.f32 %v385_v12, %v257_v26  ;;  %v417_v33 = vmax.f32 %v391_v27, 0.0 }
 0x1ad   :  { %v629_v13 = vpop.f32.mrf.mxu1 }
 0x1ae   :  { %v401_v20 = vadd.f32 %v629_v13, %v272_v14  ;;  %v416_v36 = vmax.f32 %v386_v29, 0.0 }
 0x1af   :  { %v395_v15 = vpop.f32.mrf.mxu1 }
 0x1b0   :  { %v396_v24 = vadd.f32 %v395_v15, %v267_v16  ;;  %v419_v28 = vmax.f32 %v401_v20, 0.0 }
 0x1b1   :  { %v632_v17 = vpop.f32.mrf.mxu1 }
 0x1b2   :  { %v411_v18 = vadd.f32 %v632_v17, %v282_v9  ;;  %v418_v30 = vmax.f32 %v396_v24, 0.0 }
 0x1b3   :  { %v405_v19 = vpop.f32.mrf.mxu1 }
 0x1b4   :  { %v421_v21 = vmax.f32 %v411_v18, 0.0  ;;  %v406_v22 = vadd.f32 %v405_v19, %v277_v11 }
 0x1b6   :  { %v420_v25 = vmax.f32 %v406_v22, 0.0  ;;  %634 = vmatpush3.msra.mxu0 %v421_v21 }
 0x1b7   :  { %635 = vmatprep.subr.mxu0 %v685_v6 }
 0x1b8   :  { %636 = vmatpush3.msra.mxu0 %v420_v25 }
 0x1b9   :  { %637 = vmatprep.subr.mxu0 %v685_v6 }
 0x1ba   :  { %638 = vmatpush3.msra.mxu0 %v419_v28 }
 0x1bb   :  { %639 = vmatprep.subr.mxu0 %v685_v6 }
 0x1bc   :  { %640 = vmatpush3.msra.mxu0 %v418_v30 }
 0x1bd   :  { %641 = vmatprep.subr.mxu0 %v685_v6 }
 0x1be   :  { %642 = vmatpush3.msra.mxu0 %v417_v33 }
 0x1bf   :  { %643 = vmatprep.subr.mxu0 %v685_v6 }
 0x1c0   :  { %644 = vmatpush3.msra.mxu0 %v416_v36 }
 0x1c1   :  { %645 = vmatprep.subr.mxu0 %v685_v6 }
 0x1c2   :  { %646 = vmatpush3.msra.mxu0 %v415_v37 }
 0x1c3   :  { %647 = vmatprep.subr.mxu0 %v685_v6 }
 0x1c4   :  { %648 = vmatpush3.msra.mxu0 %v414_v38 }
 0x1c5   :  { %650 = vmatmul.mubr.msk.f32.vlgmr.msra.gmra.mxu0 %vm284_vm2, %v422_v39 }
 0x285   :  { %v498_v41 = vpop.f32.mrf.mxu0 }
 0x286   :  { %v499_v42 = vadd.f32 %v498_v41, %v427_v40 }
 0x287   :  { %v651_v43 = vpop.f32.mrf.mxu0 }
 0x288   :  { %v556_v44 = vmul.f32 -1.442695, %v499_v42  ;;  %v510_v47 = vmax.f32 %v499_v42, 0.0 }
 0x28a   :  { %658 = vpow2.f32 %v556_v44  ;;  %v517_v50 = vmul.f32 %v515_v49, %v510_v47 }
 0x297   :  { %v659_v45 = vpop.eup %658 }
 0x298   :  { %v507_v46 = vadd.f32 1.0, %v659_v45 }
 0x29a   :  { %660 = vrcp.f32 %v507_v46 }
 0x2a7   :  { %v661_v51 = vpop.eup %660 }
 0x2a8   :  { %v523_v52 = vsel %vm522_vm4, %v661_v51, %v517_v50 }
 0x2a9   :  { %524 = vst [vmem:[#allocation2] sm:$0x7] %v523_v52 }
 0x2aa   :  { %673 = shalt.err (!%p670_p4)
}
 0x2ab   :  { %534 = dma.vmem_to_hbm [thread:$0]  %s532_s30, 64, %s878_s9, [#allocation3]  }
 0x2ac   :  { %682 = dma.done.wait [#allocation3], 64  }
 0x2ad   :  { %683 = vsyncadd [#allocation3], 4294967232 }
 0x2ae   :  { %538 = vsyncpa [#allocation3], 1 }

</bundles_post_ra>
